<compile_context>
chip_gen: v7x
topology: tpu7x:2x2x1
jax: 0.10.0
libtpu: 0.0.40
codegen_flags: <defaults>
</compile_context>

<pallas_src>
import math

import numpy as np
import jax
import jax.numpy as jnp
from jax.experimental import pallas as pl
from jax.experimental.pallas import tpu as pltpu


def _round_up(v, m):
    return ((v + m - 1) // m) * m


def _make_gait_kernel(n_ctrl, K):
    """n_ctrl = n + 1 Bezier control points, K = number of outputs (tiny, static)."""

    def kernel(params_ref, t_ref, o_ref):
        # params (SMEM f32[2 + n_ctrl*K]):
        #   [0] = 1/(z1-z0), [1] = -z0/(z1-z0), [2 + i*K + k] = C(n,i)*alpha[k,i]
        inv = params_ref[0]
        off = params_ref[1]

        # Phase -> clamped t in [0, 1]. t is (TILE_R, 128): batch fully dense
        # on sublanes x lanes, so every VPU op below runs at full occupancy.
        t = jnp.clip(t_ref[...] * inv + off, 0.0, 1.0)
        u = 1.0 - t

        # Unrolled Bernstein basis t^i * (1-t)^(n-i) on the VPU (n_ctrl tiny).
        if n_ctrl == 1:
            basis = [jnp.ones_like(t)]
        else:
            t_pows = [None, t]
            u_pows = [None, u]
            for _ in range(2, n_ctrl):
                t_pows.append(t_pows[-1] * t)
                u_pows.append(u_pows[-1] * u)
            basis = []
            for i in range(n_ctrl):
                if i == 0:
                    basis.append(u_pows[n_ctrl - 1])           # (1-t)^n
                elif i == n_ctrl - 1:
                    basis.append(t_pows[n_ctrl - 1])           # t^n
                else:
                    basis.append(t_pows[i] * u_pows[n_ctrl - 1 - i])

        # out[k, r, l] = sum_i basis_i[r, l] * (C(n,i) * alpha[k, i])
        # K lane-dense planes -> unmasked, full-width vector stores.
        for k in range(K):
            acc = basis[0] * params_ref[2 + k]
            for i in range(1, n_ctrl):
                acc = acc + basis[i] * params_ref[2 + i * K + k]
            o_ref[k, :, :] = acc

    return kernel


def prepare_gait_params(alpha, z_bounds):
    """One-time constant prep: fold binomials into alpha, z_bounds into an affine."""
    alpha = np.asarray(alpha, np.float32)                      # (K, n+1)
    K, n_ctrl = alpha.shape
    n = n_ctrl - 1
    binom = np.asarray([math.comb(n, i) for i in range(n_ctrl)], np.float32)
    coeff = (alpha * binom[None, :]).T.reshape(-1)             # idx i*K + k
    zb = np.asarray(z_bounds, np.float32)
    inv = np.float32(1.0 / (zb[1] - zb[0]))
    params = np.concatenate(
        [np.asarray([inv, -zb[0] * inv], np.float32), coeff])  # (2 + n_ctrl*K,)
    return jnp.asarray(params, jnp.float32), n_ctrl, K


def gait_csv_forward(x, params, n_ctrl, K, *, tile_rows=256):
    """Pallas forward: x (B, D) -> (B, K). Only x[:, 0] (the phase variable) is used."""
    B = x.shape[0]

    # Batch is carved into rows of 128 lanes; tiles are TILE_R such rows.
    R = -(-B // 128)                                           # ceil(B / 128)
    TILE_R = min(tile_rows, _round_up(R, 8))
    # v7x: keep >= 2 grid steps when the batch is big enough to split, so both
    # TensorCores get a share of the ("parallel",) batch axis.
    if TILE_R > 8 and _round_up(R, TILE_R) // TILE_R < 2:
        TILE_R = max(8, _round_up(-(-R // 2), 8))
    Rp = _round_up(R, TILE_R)

    # Only the 4-byte phase column is touched / padded on the host.
    phase = x[:, 0].astype(jnp.float32)
    if Rp * 128 != B:
        phase = jnp.pad(phase, (0, Rp * 128 - B))
    phase = phase.reshape(Rp, 128)

    out_t = pl.pallas_call(
        _make_gait_kernel(n_ctrl, K),
        out_shape=jax.ShapeDtypeStruct((K, Rp, 128), jnp.float32),
        grid=(Rp // TILE_R,),
        in_specs=[
            pl.BlockSpec(memory_space=pltpu.MemorySpace.SMEM),   # params (2+n*K,)
            pl.BlockSpec((TILE_R, 128), lambda i: (i, 0)),       # phase tile
        ],
        out_specs=pl.BlockSpec((K, TILE_R, 128), lambda i: (0, i, 0)),
        compiler_params=pltpu.CompilerParams(
            dimension_semantics=("parallel",)),
    )(params, phase)

    # (K, Rp, 128) -> (K, B) -> (B, K): one small transpose of the K outputs.
    return out_t.reshape(K, Rp * 128)[:, :B].T


def gait_csv_reference(x, alpha, z_bounds):
    """Pure-JAX mirror of the PyTorch forward."""
    K, n_ctrl = alpha.shape
    n = n_ctrl - 1
    t = (x[:, 0] - z_bounds[0]) / (z_bounds[1] - z_bounds[0])
    t = jnp.clip(t, 0.0, 1.0)[:, None]
    out = jnp.zeros((x.shape[0], K), jnp.float32)
    for i in range(n_ctrl):
        out = out + math.comb(n, i) * (1.0 - t) ** (n - i) * t ** i * alpha[None, :, i]
    return out


if __name__ == "__main__":
    # Small shapes consistent with the module: alpha is (K outputs, n+1 Bezier
    # coefficients), normally loaded from the gait .mat file; forward uses
    # x[:, 0] only (the phase variable).
    B, D = 8, 2
    K, n_ctrl = 10, 6          # degree-5 Bezier, 10 gait outputs

    key = jax.random.PRNGKey(0)
    kx, ka = jax.random.split(key, 2)
    alpha = jax.random.normal(ka, (K, n_ctrl), jnp.float32)        # gait['alpha']
    z_bounds = jnp.array([-0.25, 0.35], jnp.float32)               # gait['z1_bounds']
    x = 0.4 * jax.random.normal(kx, (B, D), jnp.float32)           # some rows clamp

    params, n_ctrl_, K_ = prepare_gait_params(alpha, z_bounds)     # once, cached
    out = jax.block_until_ready(gait_csv_forward(x, params, n_ctrl_, K_))

    ref = jax.block_until_ready(gait_csv_reference(x, alpha, z_bounds))
    np.testing.assert_allclose(np.asarray(out), np.asarray(ref),
                               rtol=1e-4, atol=1e-5)
    print("KERNEL_OK")
</pallas_src>

<mosaic_0001>
module attributes {stable_mosaic.version = 11 : i64} {
  func.func @kernel(%arg0: i32, %arg1: memref<62xf32, #tpu.memory_space<smem>>, %arg2: memref<8x128xf32, #tpu.memory_space<vmem>>, %arg3: memref<10x8x128xf32, #tpu.memory_space<vmem>>) attributes {dimension_semantics = [#tpu.dimension_semantics<parallel>], iteration_bounds = array<i64: 1>, scalar_prefetch = 0 : i64, scratch_operands = 0 : i64, tpu.core_type = #tpu.core_type<tc>, window_params = [{transform_indices = @transform_0, window_bounds = array<i64: 62>}, {transform_indices = @transform_1, window_bounds = array<i64: 8, 128>}, {transform_indices = @transform_2, window_bounds = array<i64: 10, 8, 128>}]} {
    %c0 = arith.constant 0 : index
    %0 = memref.load %arg1[%c0] : memref<62xf32, #tpu.memory_space<smem>>
    %c1 = arith.constant 1 : index
    %1 = memref.load %arg1[%c1] : memref<62xf32, #tpu.memory_space<smem>>
    %c0_0 = arith.constant 0 : index
    %c0_1 = arith.constant 0 : index
    %2 = vector.load %arg2[%c0_0, %c0_1] : memref<8x128xf32, #tpu.memory_space<vmem>>, vector<8x128xf32>
    %3 = vector.broadcast %0 : f32 to vector<8x128xf32>
    %4 = arith.mulf %2, %3 : vector<8x128xf32>
    %5 = vector.broadcast %1 : f32 to vector<8x128xf32>
    %6 = arith.addf %4, %5 : vector<8x128xf32>
    %cst = arith.constant 0.000000e+00 : f32
    %cst_2 = arith.constant 1.000000e+00 : f32
    %7 = vector.broadcast %cst : f32 to vector<8x128xf32>
    %8 = arith.maximumf %7, %6 : vector<8x128xf32>
    %9 = vector.broadcast %cst_2 : f32 to vector<8x128xf32>
    %10 = arith.minimumf %9, %8 : vector<8x128xf32>
    %cst_3 = arith.constant 1.000000e+00 : f32
    %11 = vector.broadcast %cst_3 : f32 to vector<8x128xf32>
    %12 = arith.subf %11, %10 : vector<8x128xf32>
    %13 = arith.mulf %10, %10 : vector<8x128xf32>
    %14 = arith.mulf %12, %12 : vector<8x128xf32>
    %15 = arith.mulf %13, %10 : vector<8x128xf32>
    %16 = arith.mulf %14, %12 : vector<8x128xf32>
    %17 = arith.mulf %15, %10 : vector<8x128xf32>
    %18 = arith.mulf %16, %12 : vector<8x128xf32>
    %19 = arith.mulf %17, %10 : vector<8x128xf32>
    %20 = arith.mulf %18, %12 : vector<8x128xf32>
    %21 = arith.mulf %10, %18 : vector<8x128xf32>
    %22 = arith.mulf %13, %16 : vector<8x128xf32>
    %23 = arith.mulf %15, %14 : vector<8x128xf32>
    %24 = arith.mulf %17, %12 : vector<8x128xf32>
    %c2 = arith.constant 2 : index
    %25 = memref.load %arg1[%c2] : memref<62xf32, #tpu.memory_space<smem>>
    %26 = vector.broadcast %25 : f32 to vector<8x128xf32>
    %27 = arith.mulf %20, %26 : vector<8x128xf32>
    %c12 = arith.constant 12 : index
    %28 = memref.load %arg1[%c12] : memref<62xf32, #tpu.memory_space<smem>>
    %29 = vector.broadcast %28 : f32 to vector<8x128xf32>
    %30 = arith.mulf %21, %29 : vector<8x128xf32>
    %31 = arith.addf %27, %30 : vector<8x128xf32>
    %c22 = arith.constant 22 : index
    %32 = memref.load %arg1[%c22] : memref<62xf32, #tpu.memory_space<smem>>
    %33 = vector.broadcast %32 : f32 to vector<8x128xf32>
    %34 = arith.mulf %22, %33 : vector<8x128xf32>
    %35 = arith.addf %31, %34 : vector<8x128xf32>
    %c32 = arith.constant 32 : index
    %36 = memref.load %arg1[%c32] : memref<62xf32, #tpu.memory_space<smem>>
    %37 = vector.broadcast %36 : f32 to vector<8x128xf32>
    %38 = arith.mulf %23, %37 : vector<8x128xf32>
    %39 = arith.addf %35, %38 : vector<8x128xf32>
    %c42 = arith.constant 42 : index
    %40 = memref.load %arg1[%c42] : memref<62xf32, #tpu.memory_space<smem>>
    %41 = vector.broadcast %40 : f32 to vector<8x128xf32>
    %42 = arith.mulf %24, %41 : vector<8x128xf32>
    %43 = arith.addf %39, %42 : vector<8x128xf32>
    %c52 = arith.constant 52 : index
    %44 = memref.load %arg1[%c52] : memref<62xf32, #tpu.memory_space<smem>>
    %45 = vector.broadcast %44 : f32 to vector<8x128xf32>
    %46 = arith.mulf %19, %45 : vector<8x128xf32>
    %47 = arith.addf %43, %46 : vector<8x128xf32>
    %c0_4 = arith.constant 0 : index
    %c0_5 = arith.constant 0 : index
    %c0_6 = arith.constant 0 : index
    %48 = vector.load %arg3[%c0_4, %c0_5, %c0_6] : memref<10x8x128xf32, #tpu.memory_space<vmem>>, vector<1x8x128xf32>
    %49 = vector.shape_cast %48 : vector<1x8x128xf32> to vector<8x128xf32>
    %50 = vector.shape_cast %47 : vector<8x128xf32> to vector<1x8x128xf32>
    tpu.vector_store %arg3[%c0_4, %c0_5, %c0_6], %50 {strides = array<i32>} : memref<10x8x128xf32, #tpu.memory_space<vmem>>, vector<1x8x128xf32>,
    %c3 = arith.constant 3 : index
    %51 = memref.load %arg1[%c3] : memref<62xf32, #tpu.memory_space<smem>>
    %52 = vector.broadcast %51 : f32 to vector<8x128xf32>
    %53 = arith.mulf %20, %52 : vector<8x128xf32>
    %c13 = arith.constant 13 : index
    %54 = memref.load %arg1[%c13] : memref<62xf32, #tpu.memory_space<smem>>
    %55 = vector.broadcast %54 : f32 to vector<8x128xf32>
    %56 = arith.mulf %21, %55 : vector<8x128xf32>
    %57 = arith.addf %53, %56 : vector<8x128xf32>
    %c23 = arith.constant 23 : index
    %58 = memref.load %arg1[%c23] : memref<62xf32, #tpu.memory_space<smem>>
    %59 = vector.broadcast %58 : f32 to vector<8x128xf32>
    %60 = arith.mulf %22, %59 : vector<8x128xf32>
    %61 = arith.addf %57, %60 : vector<8x128xf32>
    %c33 = arith.constant 33 : index
    %62 = memref.load %arg1[%c33] : memref<62xf32, #tpu.memory_space<smem>>
    %63 = vector.broadcast %62 : f32 to vector<8x128xf32>
    %64 = arith.mulf %23, %63 : vector<8x128xf32>
    %65 = arith.addf %61, %64 : vector<8x128xf32>
    %c43 = arith.constant 43 : index
    %66 = memref.load %arg1[%c43] : memref<62xf32, #tpu.memory_space<smem>>
    %67 = vector.broadcast %66 : f32 to vector<8x128xf32>
    %68 = arith.mulf %24, %67 : vector<8x128xf32>
    %69 = arith.addf %65, %68 : vector<8x128xf32>
    %c53 = arith.constant 53 : index
    %70 = memref.load %arg1[%c53] : memref<62xf32, #tpu.memory_space<smem>>
    %71 = vector.broadcast %70 : f32 to vector<8x128xf32>
    %72 = arith.mulf %19, %71 : vector<8x128xf32>
    %73 = arith.addf %69, %72 : vector<8x128xf32>
    %c1_7 = arith.constant 1 : index
    %c0_8 = arith.constant 0 : index
    %c0_9 = arith.constant 0 : index
    %74 = vector.load %arg3[%c1_7, %c0_8, %c0_9] : memref<10x8x128xf32, #tpu.memory_space<vmem>>, vector<1x8x128xf32>
    %75 = vector.shape_cast %74 : vector<1x8x128xf32> to vector<8x128xf32>
    %76 = vector.shape_cast %73 : vector<8x128xf32> to vector<1x8x128xf32>
    tpu.vector_store %arg3[%c1_7, %c0_8, %c0_9], %76 {strides = array<i32>} : memref<10x8x128xf32, #tpu.memory_space<vmem>>, vector<1x8x128xf32>,
    %c4 = arith.constant 4 : index
    %77 = memref.load %arg1[%c4] : memref<62xf32, #tpu.memory_space<smem>>
    %78 = vector.broadcast %77 : f32 to vector<8x128xf32>
    %79 = arith.mulf %20, %78 : vector<8x128xf32>
    %c14 = arith.constant 14 : index
    %80 = memref.load %arg1[%c14] : memref<62xf32, #tpu.memory_space<smem>>
    %81 = vector.broadcast %80 : f32 to vector<8x128xf32>
    %82 = arith.mulf %21, %81 : vector<8x128xf32>
    %83 = arith.addf %79, %82 : vector<8x128xf32>
    %c24 = arith.constant 24 : index
    %84 = memref.load %arg1[%c24] : memref<62xf32, #tpu.memory_space<smem>>
    %85 = vector.broadcast %84 : f32 to vector<8x128xf32>
    %86 = arith.mulf %22, %85 : vector<8x128xf32>
    %87 = arith.addf %83, %86 : vector<8x128xf32>
    %c34 = arith.constant 34 : index
    %88 = memref.load %arg1[%c34] : memref<62xf32, #tpu.memory_space<smem>>
    %89 = vector.broadcast %88 : f32 to vector<8x128xf32>
    %90 = arith.mulf %23, %89 : vector<8x128xf32>
    %91 = arith.addf %87, %90 : vector<8x128xf32>
    %c44 = arith.constant 44 : index
    %92 = memref.load %arg1[%c44] : memref<62xf32, #tpu.memory_space<smem>>
    %93 = vector.broadcast %92 : f32 to vector<8x128xf32>
    %94 = arith.mulf %24, %93 : vector<8x128xf32>
    %95 = arith.addf %91, %94 : vector<8x128xf32>
    %c54 = arith.constant 54 : index
    %96 = memref.load %arg1[%c54] : memref<62xf32, #tpu.memory_space<smem>>
    %97 = vector.broadcast %96 : f32 to vector<8x128xf32>
    %98 = arith.mulf %19, %97 : vector<8x128xf32>
    %99 = arith.addf %95, %98 : vector<8x128xf32>
    %c2_10 = arith.constant 2 : index
    %c0_11 = arith.constant 0 : index
    %c0_12 = arith.constant 0 : index
    %100 = vector.load %arg3[%c2_10, %c0_11, %c0_12] : memref<10x8x128xf32, #tpu.memory_space<vmem>>, vector<1x8x128xf32>
    %101 = vector.shape_cast %100 : vector<1x8x128xf32> to vector<8x128xf32>
    %102 = vector.shape_cast %99 : vector<8x128xf32> to vector<1x8x128xf32>
    tpu.vector_store %arg3[%c2_10, %c0_11, %c0_12], %102 {strides = array<i32>} : memref<10x8x128xf32, #tpu.memory_space<vmem>>, vector<1x8x128xf32>,
    %c5 = arith.constant 5 : index
    %103 = memref.load %arg1[%c5] : memref<62xf32, #tpu.memory_space<smem>>
    %104 = vector.broadcast %103 : f32 to vector<8x128xf32>
    %105 = arith.mulf %20, %104 : vector<8x128xf32>
    %c15 = arith.constant 15 : index
    %106 = memref.load %arg1[%c15] : memref<62xf32, #tpu.memory_space<smem>>
    %107 = vector.broadcast %106 : f32 to vector<8x128xf32>
    %108 = arith.mulf %21, %107 : vector<8x128xf32>
    %109 = arith.addf %105, %108 : vector<8x128xf32>
    %c25 = arith.constant 25 : index
    %110 = memref.load %arg1[%c25] : memref<62xf32, #tpu.memory_space<smem>>
    %111 = vector.broadcast %110 : f32 to vector<8x128xf32>
    %112 = arith.mulf %22, %111 : vector<8x128xf32>
    %113 = arith.addf %109, %112 : vector<8x128xf32>
    %c35 = arith.constant 35 : index
    %114 = memref.load %arg1[%c35] : memref<62xf32, #tpu.memory_space<smem>>
    %115 = vector.broadcast %114 : f32 to vector<8x128xf32>
    %116 = arith.mulf %23, %115 : vector<8x128xf32>
    %117 = arith.addf %113, %116 : vector<8x128xf32>
    %c45 = arith.constant 45 : index
    %118 = memref.load %arg1[%c45] : memref<62xf32, #tpu.memory_space<smem>>
    %119 = vector.broadcast %118 : f32 to vector<8x128xf32>
    %120 = arith.mulf %24, %119 : vector<8x128xf32>
    %121 = arith.addf %117, %120 : vector<8x128xf32>
    %c55 = arith.constant 55 : index
    %122 = memref.load %arg1[%c55] : memref<62xf32, #tpu.memory_space<smem>>
    %123 = vector.broadcast %122 : f32 to vector<8x128xf32>
    %124 = arith.mulf %19, %123 : vector<8x128xf32>
    %125 = arith.addf %121, %124 : vector<8x128xf32>
    %c3_13 = arith.constant 3 : index
    %c0_14 = arith.constant 0 : index
    %c0_15 = arith.constant 0 : index
    %126 = vector.load %arg3[%c3_13, %c0_14, %c0_15] : memref<10x8x128xf32, #tpu.memory_space<vmem>>, vector<1x8x128xf32>
    %127 = vector.shape_cast %126 : vector<1x8x128xf32> to vector<8x128xf32>
    %128 = vector.shape_cast %125 : vector<8x128xf32> to vector<1x8x128xf32>
    tpu.vector_store %arg3[%c3_13, %c0_14, %c0_15], %128 {strides = array<i32>} : memref<10x8x128xf32, #tpu.memory_space<vmem>>, vector<1x8x128xf32>,
    %c6 = arith.constant 6 : index
    %129 = memref.load %arg1[%c6] : memref<62xf32, #tpu.memory_space<smem>>
    %130 = vector.broadcast %129 : f32 to vector<8x128xf32>
    %131 = arith.mulf %20, %130 : vector<8x128xf32>
    %c16 = arith.constant 16 : index
    %132 = memref.load %arg1[%c16] : memref<62xf32, #tpu.memory_space<smem>>
    %133 = vector.broadcast %132 : f32 to vector<8x128xf32>
    %134 = arith.mulf %21, %133 : vector<8x128xf32>
    %135 = arith.addf %131, %134 : vector<8x128xf32>
    %c26 = arith.constant 26 : index
    %136 = memref.load %arg1[%c26] : memref<62xf32, #tpu.memory_space<smem>>
    %137 = vector.broadcast %136 : f32 to vector<8x128xf32>
    %138 = arith.mulf %22, %137 : vector<8x128xf32>
    %139 = arith.addf %135, %138 : vector<8x128xf32>
    %c36 = arith.constant 36 : index
    %140 = memref.load %arg1[%c36] : memref<62xf32, #tpu.memory_space<smem>>
    %141 = vector.broadcast %140 : f32 to vector<8x128xf32>
    %142 = arith.mulf %23, %141 : vector<8x128xf32>
    %143 = arith.addf %139, %142 : vector<8x128xf32>
    %c46 = arith.constant 46 : index
    %144 = memref.load %arg1[%c46] : memref<62xf32, #tpu.memory_space<smem>>
    %145 = vector.broadcast %144 : f32 to vector<8x128xf32>
    %146 = arith.mulf %24, %145 : vector<8x128xf32>
    %147 = arith.addf %143, %146 : vector<8x128xf32>
    %c56 = arith.constant 56 : index
    %148 = memref.load %arg1[%c56] : memref<62xf32, #tpu.memory_space<smem>>
    %149 = vector.broadcast %148 : f32 to vector<8x128xf32>
    %150 = arith.mulf %19, %149 : vector<8x128xf32>
    %151 = arith.addf %147, %150 : vector<8x128xf32>
    %c4_16 = arith.constant 4 : index
    %c0_17 = arith.constant 0 : index
    %c0_18 = arith.constant 0 : index
    %152 = vector.load %arg3[%c4_16, %c0_17, %c0_18] : memref<10x8x128xf32, #tpu.memory_space<vmem>>, vector<1x8x128xf32>
    %153 = vector.shape_cast %152 : vector<1x8x128xf32> to vector<8x128xf32>
    %154 = vector.shape_cast %151 : vector<8x128xf32> to vector<1x8x128xf32>
    tpu.vector_store %arg3[%c4_16, %c0_17, %c0_18], %154 {strides = array<i32>} : memref<10x8x128xf32, #tpu.memory_space<vmem>>, vector<1x8x128xf32>,
    %c7 = arith.constant 7 : index
    %155 = memref.load %arg1[%c7] : memref<62xf32, #tpu.memory_space<smem>>
    %156 = vector.broadcast %155 : f32 to vector<8x128xf32>
    %157 = arith.mulf %20, %156 : vector<8x128xf32>
    %c17 = arith.constant 17 : index
    %158 = memref.load %arg1[%c17] : memref<62xf32, #tpu.memory_space<smem>>
    %159 = vector.broadcast %158 : f32 to vector<8x128xf32>
    %160 = arith.mulf %21, %159 : vector<8x128xf32>
    %161 = arith.addf %157, %160 : vector<8x128xf32>
    %c27 = arith.constant 27 : index
    %162 = memref.load %arg1[%c27] : memref<62xf32, #tpu.memory_space<smem>>
    %163 = vector.broadcast %162 : f32 to vector<8x128xf32>
    %164 = arith.mulf %22, %163 : vector<8x128xf32>
    %165 = arith.addf %161, %164 : vector<8x128xf32>
    %c37 = arith.constant 37 : index
    %166 = memref.load %arg1[%c37] : memref<62xf32, #tpu.memory_space<smem>>
    %167 = vector.broadcast %166 : f32 to vector<8x128xf32>
    %168 = arith.mulf %23, %167 : vector<8x128xf32>
    %169 = arith.addf %165, %168 : vector<8x128xf32>
    %c47 = arith.constant 47 : index
    %170 = memref.load %arg1[%c47] : memref<62xf32, #tpu.memory_space<smem>>
    %171 = vector.broadcast %170 : f32 to vector<8x128xf32>
    %172 = arith.mulf %24, %171 : vector<8x128xf32>
    %173 = arith.addf %169, %172 : vector<8x128xf32>
    %c57 = arith.constant 57 : index
    %174 = memref.load %arg1[%c57] : memref<62xf32, #tpu.memory_space<smem>>
    %175 = vector.broadcast %174 : f32 to vector<8x128xf32>
    %176 = arith.mulf %19, %175 : vector<8x128xf32>
    %177 = arith.addf %173, %176 : vector<8x128xf32>
    %c5_19 = arith.constant 5 : index
    %c0_20 = arith.constant 0 : index
    %c0_21 = arith.constant 0 : index
    %178 = vector.load %arg3[%c5_19, %c0_20, %c0_21] : memref<10x8x128xf32, #tpu.memory_space<vmem>>, vector<1x8x128xf32>
    %179 = vector.shape_cast %178 : vector<1x8x128xf32> to vector<8x128xf32>
    %180 = vector.shape_cast %177 : vector<8x128xf32> to vector<1x8x128xf32>
    tpu.vector_store %arg3[%c5_19, %c0_20, %c0_21], %180 {strides = array<i32>} : memref<10x8x128xf32, #tpu.memory_space<vmem>>, vector<1x8x128xf32>,
    %c8 = arith.constant 8 : index
    %181 = memref.load %arg1[%c8] : memref<62xf32, #tpu.memory_space<smem>>
    %182 = vector.broadcast %181 : f32 to vector<8x128xf32>
    %183 = arith.mulf %20, %182 : vector<8x128xf32>
    %c18 = arith.constant 18 : index
    %184 = memref.load %arg1[%c18] : memref<62xf32, #tpu.memory_space<smem>>
    %185 = vector.broadcast %184 : f32 to vector<8x128xf32>
    %186 = arith.mulf %21, %185 : vector<8x128xf32>
    %187 = arith.addf %183, %186 : vector<8x128xf32>
    %c28 = arith.constant 28 : index
    %188 = memref.load %arg1[%c28] : memref<62xf32, #tpu.memory_space<smem>>
    %189 = vector.broadcast %188 : f32 to vector<8x128xf32>
    %190 = arith.mulf %22, %189 : vector<8x128xf32>
    %191 = arith.addf %187, %190 : vector<8x128xf32>
    %c38 = arith.constant 38 : index
    %192 = memref.load %arg1[%c38] : memref<62xf32, #tpu.memory_space<smem>>
    %193 = vector.broadcast %192 : f32 to vector<8x128xf32>
    %194 = arith.mulf %23, %193 : vector<8x128xf32>
    %195 = arith.addf %191, %194 : vector<8x128xf32>
    %c48 = arith.constant 48 : index
    %196 = memref.load %arg1[%c48] : memref<62xf32, #tpu.memory_space<smem>>
    %197 = vector.broadcast %196 : f32 to vector<8x128xf32>
    %198 = arith.mulf %24, %197 : vector<8x128xf32>
    %199 = arith.addf %195, %198 : vector<8x128xf32>
    %c58 = arith.constant 58 : index
    %200 = memref.load %arg1[%c58] : memref<62xf32, #tpu.memory_space<smem>>
    %201 = vector.broadcast %200 : f32 to vector<8x128xf32>
    %202 = arith.mulf %19, %201 : vector<8x128xf32>
    %203 = arith.addf %199, %202 : vector<8x128xf32>
    %c6_22 = arith.constant 6 : index
    %c0_23 = arith.constant 0 : index
    %c0_24 = arith.constant 0 : index
    %204 = vector.load %arg3[%c6_22, %c0_23, %c0_24] : memref<10x8x128xf32, #tpu.memory_space<vmem>>, vector<1x8x128xf32>
    %205 = vector.shape_cast %204 : vector<1x8x128xf32> to vector<8x128xf32>
    %206 = vector.shape_cast %203 : vector<8x128xf32> to vector<1x8x128xf32>
    tpu.vector_store %arg3[%c6_22, %c0_23, %c0_24], %206 {strides = array<i32>} : memref<10x8x128xf32, #tpu.memory_space<vmem>>, vector<1x8x128xf32>,
    %c9 = arith.constant 9 : index
    %207 = memref.load %arg1[%c9] : memref<62xf32, #tpu.memory_space<smem>>
    %208 = vector.broadcast %207 : f32 to vector<8x128xf32>
    %209 = arith.mulf %20, %208 : vector<8x128xf32>
    %c19 = arith.constant 19 : index
    %210 = memref.load %arg1[%c19] : memref<62xf32, #tpu.memory_space<smem>>
    %211 = vector.broadcast %210 : f32 to vector<8x128xf32>
    %212 = arith.mulf %21, %211 : vector<8x128xf32>
    %213 = arith.addf %209, %212 : vector<8x128xf32>
    %c29 = arith.constant 29 : index
    %214 = memref.load %arg1[%c29] : memref<62xf32, #tpu.memory_space<smem>>
    %215 = vector.broadcast %214 : f32 to vector<8x128xf32>
    %216 = arith.mulf %22, %215 : vector<8x128xf32>
    %217 = arith.addf %213, %216 : vector<8x128xf32>
    %c39 = arith.constant 39 : index
    %218 = memref.load %arg1[%c39] : memref<62xf32, #tpu.memory_space<smem>>
    %219 = vector.broadcast %218 : f32 to vector<8x128xf32>
    %220 = arith.mulf %23, %219 : vector<8x128xf32>
    %221 = arith.addf %217, %220 : vector<8x128xf32>
    %c49 = arith.constant 49 : index
    %222 = memref.load %arg1[%c49] : memref<62xf32, #tpu.memory_space<smem>>
    %223 = vector.broadcast %222 : f32 to vector<8x128xf32>
    %224 = arith.mulf %24, %223 : vector<8x128xf32>
    %225 = arith.addf %221, %224 : vector<8x128xf32>
    %c59 = arith.constant 59 : index
    %226 = memref.load %arg1[%c59] : memref<62xf32, #tpu.memory_space<smem>>
    %227 = vector.broadcast %226 : f32 to vector<8x128xf32>
    %228 = arith.mulf %19, %227 : vector<8x128xf32>
    %229 = arith.addf %225, %228 : vector<8x128xf32>
    %c7_25 = arith.constant 7 : index
    %c0_26 = arith.constant 0 : index
    %c0_27 = arith.constant 0 : index
    %230 = vector.load %arg3[%c7_25, %c0_26, %c0_27] : memref<10x8x128xf32, #tpu.memory_space<vmem>>, vector<1x8x128xf32>
    %231 = vector.shape_cast %230 : vector<1x8x128xf32> to vector<8x128xf32>
    %232 = vector.shape_cast %229 : vector<8x128xf32> to vector<1x8x128xf32>
    tpu.vector_store %arg3[%c7_25, %c0_26, %c0_27], %232 {strides = array<i32>} : memref<10x8x128xf32, #tpu.memory_space<vmem>>, vector<1x8x128xf32>,
    %c10 = arith.constant 10 : index
    %233 = memref.load %arg1[%c10] : memref<62xf32, #tpu.memory_space<smem>>
    %234 = vector.broadcast %233 : f32 to vector<8x128xf32>
    %235 = arith.mulf %20, %234 : vector<8x128xf32>
    %c20 = arith.constant 20 : index
    %236 = memref.load %arg1[%c20] : memref<62xf32, #tpu.memory_space<smem>>
    %237 = vector.broadcast %236 : f32 to vector<8x128xf32>
    %238 = arith.mulf %21, %237 : vector<8x128xf32>
    %239 = arith.addf %235, %238 : vector<8x128xf32>
    %c30 = arith.constant 30 : index
    %240 = memref.load %arg1[%c30] : memref<62xf32, #tpu.memory_space<smem>>
    %241 = vector.broadcast %240 : f32 to vector<8x128xf32>
    %242 = arith.mulf %22, %241 : vector<8x128xf32>
    %243 = arith.addf %239, %242 : vector<8x128xf32>
    %c40 = arith.constant 40 : index
    %244 = memref.load %arg1[%c40] : memref<62xf32, #tpu.memory_space<smem>>
    %245 = vector.broadcast %244 : f32 to vector<8x128xf32>
    %246 = arith.mulf %23, %245 : vector<8x128xf32>
    %247 = arith.addf %243, %246 : vector<8x128xf32>
    %c50 = arith.constant 50 : index
    %248 = memref.load %arg1[%c50] : memref<62xf32, #tpu.memory_space<smem>>
    %249 = vector.broadcast %248 : f32 to vector<8x128xf32>
    %250 = arith.mulf %24, %249 : vector<8x128xf32>
    %251 = arith.addf %247, %250 : vector<8x128xf32>
    %c60 = arith.constant 60 : index
    %252 = memref.load %arg1[%c60] : memref<62xf32, #tpu.memory_space<smem>>
    %253 = vector.broadcast %252 : f32 to vector<8x128xf32>
    %254 = arith.mulf %19, %253 : vector<8x128xf32>
    %255 = arith.addf %251, %254 : vector<8x128xf32>
    %c8_28 = arith.constant 8 : index
    %c0_29 = arith.constant 0 : index
    %c0_30 = arith.constant 0 : index
    %256 = vector.load %arg3[%c8_28, %c0_29, %c0_30] : memref<10x8x128xf32, #tpu.memory_space<vmem>>, vector<1x8x128xf32>
    %257 = vector.shape_cast %256 : vector<1x8x128xf32> to vector<8x128xf32>
    %258 = vector.shape_cast %255 : vector<8x128xf32> to vector<1x8x128xf32>
    tpu.vector_store %arg3[%c8_28, %c0_29, %c0_30], %258 {strides = array<i32>} : memref<10x8x128xf32, #tpu.memory_space<vmem>>, vector<1x8x128xf32>,
    %c11 = arith.constant 11 : index
    %259 = memref.load %arg1[%c11] : memref<62xf32, #tpu.memory_space<smem>>
    %260 = vector.broadcast %259 : f32 to vector<8x128xf32>
    %261 = arith.mulf %20, %260 : vector<8x128xf32>
    %c21 = arith.constant 21 : index
    %262 = memref.load %arg1[%c21] : memref<62xf32, #tpu.memory_space<smem>>
    %263 = vector.broadcast %262 : f32 to vector<8x128xf32>
    %264 = arith.mulf %21, %263 : vector<8x128xf32>
    %265 = arith.addf %261, %264 : vector<8x128xf32>
    %c31 = arith.constant 31 : index
    %266 = memref.load %arg1[%c31] : memref<62xf32, #tpu.memory_space<smem>>
    %267 = vector.broadcast %266 : f32 to vector<8x128xf32>
    %268 = arith.mulf %22, %267 : vector<8x128xf32>
    %269 = arith.addf %265, %268 : vector<8x128xf32>
    %c41 = arith.constant 41 : index
    %270 = memref.load %arg1[%c41] : memref<62xf32, #tpu.memory_space<smem>>
    %271 = vector.broadcast %270 : f32 to vector<8x128xf32>
    %272 = arith.mulf %23, %271 : vector<8x128xf32>
    %273 = arith.addf %269, %272 : vector<8x128xf32>
    %c51 = arith.constant 51 : index
    %274 = memref.load %arg1[%c51] : memref<62xf32, #tpu.memory_space<smem>>
    %275 = vector.broadcast %274 : f32 to vector<8x128xf32>
    %276 = arith.mulf %24, %275 : vector<8x128xf32>
    %277 = arith.addf %273, %276 : vector<8x128xf32>
    %c61 = arith.constant 61 : index
    %278 = memref.load %arg1[%c61] : memref<62xf32, #tpu.memory_space<smem>>
    %279 = vector.broadcast %278 : f32 to vector<8x128xf32>
    %280 = arith.mulf %19, %279 : vector<8x128xf32>
    %281 = arith.addf %277, %280 : vector<8x128xf32>
    %c9_31 = arith.constant 9 : index
    %c0_32 = arith.constant 0 : index
    %c0_33 = arith.constant 0 : index
    %282 = vector.load %arg3[%c9_31, %c0_32, %c0_33] : memref<10x8x128xf32, #tpu.memory_space<vmem>>, vector<1x8x128xf32>
    %283 = vector.shape_cast %282 : vector<1x8x128xf32> to vector<8x128xf32>
    %284 = vector.shape_cast %281 : vector<8x128xf32> to vector<1x8x128xf32>
    tpu.vector_store %arg3[%c9_31, %c0_32, %c0_33], %284 {strides = array<i32>} : memref<10x8x128xf32, #tpu.memory_space<vmem>>, vector<1x8x128xf32>,
    return
  }
  func.func @transform_0(%arg0: i32) -> i32 {
    %c0_i32 = arith.constant 0 : i32
    %c0_i32_0 = arith.constant 0 : i32
    return %c0_i32 : i32
  }
  func.func @transform_1(%arg0: i32) -> (i32, i32) {
    %c0_i32 = arith.constant 0 : i32
    %c0_i32_0 = arith.constant 0 : i32
    return %arg0, %c0_i32 : i32, i32
  }
  func.func @transform_2(%arg0: i32) -> (i32, i32, i32) {
    %c0_i32 = arith.constant 0 : i32
    %c0_i32_0 = arith.constant 0 : i32
    %c0_i32_1 = arith.constant 0 : i32
    return %c0_i32, %arg0, %c0_i32_0 : i32, i32, i32
  }
}

</mosaic_0001>

<bundles_post_ra>
// kernel: tpu_custom_call.1
= control target key start
LH: loop header
LB: loop body
LE: loop exit
PB: predicated region body
PF: predicated region fallthrough
CT: control target
= control target key end

     0   :  { %7 = vsyncpa [#allocation5], 0  ;;  %s758_s0 = inlined_call_operand.hbm [shape: f32[62], index: 0, kind: input, shape index: {}]   ;;  %s759_s1 = inlined_call_operand.hbm [shape: f32[8,128], index: 1, kind: input, shape index: {}]   ;;  %s760_s2 = inlined_call_operand.hbm [shape: f32[10,8,128], index: 2, kind: output, shape index: {}]  }
   0x1   :  { %8 = vsyncpa [#allocation3], 0 }
   0x2   :  { %9 = vsyncpa [#allocation4], 0  ;;  %s390_s11 = scalar_lea.hbm %s758_s0, 16 }
   0x3   :  { %p391_p0 = scmp.ne.s32.totalorder %s758_s0, %s390_s11  ;;  %p394_p1 = scmp.lt.u32.totalorder %s390_s11, %s758_s0 }
   0x5   :  { %p396_p2 = pnand %p394_p1, %p391_p0 }
   0x7   :  { %399 = shalt.err (!%p396_p2)
}
   0x8   :  { %s450_s16 = smov [#allocation2]   ;;  %s451_s19 = smov [#allocation6]  }
   0x9   :  { %17 = dma.hbm_to_smem %s758_s0, 16, %s450_s16, [#allocation5]  }
   0xa   :  { %s24_s20 = sshll.u32 %s451_s19, 4  ;;  %s400_s23 = scalar_lea.hbm %s759_s1, 128  ;;  %s25_s20 = int_to_ptr.vmem [resolvable:$true] %s24_s20 }
   0xb   :  { %p401_p3 = scmp.ne.s32.totalorder %s759_s1, %s400_s23  ;;  %p404_p4 = scmp.lt.u32.totalorder %s400_s23, %s759_s1 }
   0xd   :  { %p406_p5 = pnand %p404_p4, %p401_p3 }
   0xf   :  { %409 = shalt.err (!%p406_p5)
}
  0x10   :  { %s410_s28 = scalar_lea.vmem %s25_s20, 128  ;;  %p415_p7 = scmp.lt.s32.totalorder %s25_s20, %s25_s20 }
  0x11   :  { %p411_p6 = scmp.ne.s32.totalorder %s25_s20, %s410_s28  ;;  %p416_p8 = scmp.lt.s32.totalorder %s410_s28, %s410_s28 }
  0x13   :  { %p417_p9 = por %p416_p8, %p415_p7 }
  0x15   :  { %p418_p10 = pnand %p417_p9, %p411_p6 }
  0x17   :  { %421 = shalt.err (!%p418_p10)
}
  0x18   :  { %27 = dma.hbm_to_vmem [thread:$0]  %s759_s1, 128, %s25_s20, [#allocation3]  }
  0x19   :  { %444 = dma.done.wait [#allocation5], 16  }
  0x1a   :  { %445 = vsyncadd [#allocation5], 4294967280 }
  0x1b   :  { %446 = dma.done.wait [#allocation3], 128  }
  0x1c   :  { %447 = vsyncadd [#allocation3], 4294967168 }
  0x1d   :  { %34 = sfence }
  0x1e   :  { %s35_s30 = sld [smem:[#allocation2]]  ;;  %s324_s3 = sld [smem:[#allocation2 + $0x1]]  ;;  %v37_v0 = vld [vmem:[#allocation6] sm:$0xff] }
  0x1f   :  { %s494_s4 = sld [smem:[#allocation2 + $0x2]]  ;;  %s496_s5 = sld [smem:[#allocation2 + $0xc]] }
  0x20   :  { %s498_s6 = sld [smem:[#allocation2 + $0x16]]  ;;  %s500_s7 = sld [smem:[#allocation2 + $0x20]] }
  0x21   :  { %s502_s8 = sld [smem:[#allocation2 + $0x2a]]  ;;  %s504_s9 = sld [smem:[#allocation2 + $0x34]] }
  0x22   :  { %s506_s1 = sld [smem:[#allocation2 + $0x3]]  ;;  %s508_s10 = sld [smem:[#allocation2 + $0xd]] }
  0x23   :  { %s510_s11 = sld [smem:[#allocation2 + $0x17]]  ;;  %s512_s12 = sld [smem:[#allocation2 + $0x21]] }
  0x24   :  { %v38_v1 = vstv %s35_s30  ;;  %v40_v2 = vstv %s324_s3  ;;  %s514_s13 = sld [smem:[#allocation2 + $0x2b]]  ;;  %s516_s14 = sld [smem:[#allocation2 + $0x35]] }
  0x25   :  { %v39_v3 = vmul.f32 %v38_v1, %v37_v0  ;;  %s518_s15 = sld [smem:[#allocation2 + $0x4]]  ;;  %s520_s16 = sld [smem:[#allocation2 + $0xe]]  ;;  %v58_v6 = vstv %s494_s4  ;;  %v61_v7 = vstv %s496_s5 }
  0x26   :  { %s522_s17 = sld [smem:[#allocation2 + $0x18]]  ;;  %s524_s18 = sld [smem:[#allocation2 + $0x22]]  ;;  %v65_v8 = vstv %s498_s6  ;;  %v69_v9 = vstv %s500_s7 }
  0x27   :  { %v41_v4 = vadd.f32 %v40_v2, %v39_v3  ;;  %s526_s19 = sld [smem:[#allocation2 + $0x2c]]  ;;  %s528_s20 = sld [smem:[#allocation2 + $0x36]]  ;;  %v73_v11 = vstv %s502_s8  ;;  %v77_v12 = vstv %s504_s9 }
  0x28   :  { %s530_s21 = sld [smem:[#allocation2 + $0x5]]  ;;  %s532_s22 = sld [smem:[#allocation2 + $0xf]]  ;;  %v82_v13 = vstv %s506_s1  ;;  %v85_v14 = vstv %s508_s10 }
  0x29   :  { %v42_v5 = vmax.f32 %v41_v4, 0.0  ;;  %s534_s23 = sld [smem:[#allocation2 + $0x19]]  ;;  %s536_s24 = sld [smem:[#allocation2 + $0x23]]  ;;  %v89_v15 = vstv %s510_s11  ;;  %v93_v16 = vstv %s512_s12 }
  0x2a   :  { %s542_s25 = sld [smem:[#allocation2 + $0x2d]]  ;;  %s544_s26 = sld [smem:[#allocation2 + $0x37]]  ;;  %v97_v17 = vstv %s514_s13  ;;  %v101_v20 = vstv %s516_s14 }
  0x2b   :  { %v43_v10 = vmin.f32 %v42_v5, 1.0  ;;  %s549_s27 = sld [smem:[#allocation2 + $0x6]]  ;;  %s551_s28 = sld [smem:[#allocation2 + $0x10]]  ;;  %v107_v21 = vstv %s518_s15  ;;  %v110_v22 = vstv %s520_s16 }
  0x2c   :  { %s557_s0 = sld [smem:[#allocation2 + $0x1a]]  ;;  %s559_s29 = sld [smem:[#allocation2 + $0x24]]  ;;  %v114_v23 = vstv %s522_s17  ;;  %v118_v24 = vstv %s524_s18 }
  0x2d   :  { %v44_v18 = vsub.f32 1.0, %v43_v10  ;;  %v45_v19 = vmul.f32 %v43_v10, %v43_v10  ;;  %v122_v25 = vstv %s526_s19  ;;  %v126_v28 = vstv %s528_s20  ;;  %s596_s30 = sld [smem:[#allocation2 + $0x2e]]  ;;  %s606_s3 = sld [smem:[#allocation2 + $0x38]] }
  0x2e   :  { %v132_v29 = vstv %s530_s21  ;;  %v135_v30 = vstv %s532_s22  ;;  %s608_s4 = sld [smem:[#allocation2 + $0x7]]  ;;  %s616_s5 = sld [smem:[#allocation2 + $0x11]] }
  0x2f   :  { %v46_v26 = vmul.f32 %v44_v18, %v44_v18  ;;  %v47_v27 = vmul.f32 %v45_v19, %v43_v10  ;;  %v139_v31 = vstv %s534_s23  ;;  %v143_v32 = vstv %s536_s24  ;;  %s621_s6 = sld [smem:[#allocation2 + $0x1b]]  ;;  %s625_s7 = sld [smem:[#allocation2 + $0x25]] }
  0x30   :  { %v147_v33 = vstv %s542_s25  ;;  %v151_v37 = vstv %s544_s26  ;;  %s627_s8 = sld [smem:[#allocation2 + $0x2f]]  ;;  %s633_s9 = sld [smem:[#allocation2 + $0x39]] }
  0x31   :  { %v48_v34 = vmul.f32 %v46_v26, %v44_v18  ;;  %v49_v35 = vmul.f32 %v47_v27, %v43_v10  ;;  %v573_v36 = vmul.f32 %v47_v27, %v46_v26  ;;  %v157_v38 = vstv %s549_s27  ;;  %s635_s1 = sld [smem:[#allocation2 + $0x8]]  ;;  %s638_s10 = sld [smem:[#allocation2 + $0x12]] }
  0x32   :  { %v160_v39 = vstv %s551_s28  ;;  %v164_v40 = vstv %s557_s0  ;;  %v168_v41 = vstv %s559_s29  ;;  %s640_s11 = sld [smem:[#allocation2 + $0x1c]]  ;;  %s644_s12 = sld [smem:[#allocation2 + $0x26]] }
  0x33   :  { %v50_v42 = vmul.f32 %v48_v34, %v44_v18  ;;  %v580_v43 = vmul.f32 %v49_v35, %v43_v10  ;;  %v582_v44 = vmul.f32 %v48_v34, %v45_v19  ;;  %v584_v45 = vmul.f32 %v49_v35, %v44_v18  ;;  %s646_s13 = sld [smem:[#allocation2 + $0x30]]  ;;  %s651_s14 = sld [smem:[#allocation2 + $0x9]] }
  0x34   :  { %v70_v46 = vmul.f32 %v69_v9, %v573_v36  ;;  %v94_v47 = vmul.f32 %v93_v16, %v573_v36  ;;  %v119_v48 = vmul.f32 %v118_v24, %v573_v36  ;;  %v144_v49 = vmul.f32 %v143_v32, %v573_v36  ;;  %s653_s15 = sld [smem:[#allocation2 + $0x13]]  ;;  %s656_s16 = sld [smem:[#allocation2 + $0x3a]] }
  0x35   :  { %v590_v50 = vmul.f32 %v50_v42, %v44_v18  ;;  %v592_v51 = vmul.f32 %v50_v42, %v43_v10  ;;  %v66_v52 = vmul.f32 %v65_v8, %v582_v44  ;;  %v74_v53 = vmul.f32 %v73_v11, %v584_v45  ;;  %s658_s17 = sld [smem:[#allocation2 + $0x1d]]  ;;  %s663_s18 = sld [smem:[#allocation2 + $0x27]] }
  0x36   :  { %v78_v54 = vmul.f32 %v77_v12, %v580_v43  ;;  %v90_v55 = vmul.f32 %v89_v15, %v582_v44  ;;  %v98_v56 = vmul.f32 %v97_v17, %v584_v45  ;;  %v102_v57 = vmul.f32 %v101_v20, %v580_v43  ;;  %s665_s19 = sld [smem:[#allocation2 + $0x31]]  ;;  %s672_s20 = sld [smem:[#allocation2 + $0x3b]] }
  0x37   :  { %v59_v58 = vmul.f32 %v58_v6, %v590_v50  ;;  %v62_v59 = vmul.f32 %v61_v7, %v592_v51  ;;  %v83_v60 = vmul.f32 %v82_v13, %v590_v50  ;;  %v86_v61 = vmul.f32 %v85_v14, %v592_v51  ;;  %s674_s21 = sld [smem:[#allocation2 + $0xa]]  ;;  %s678_s22 = sld [smem:[#allocation2 + $0x14]] }
  0x38   :  { %v108_v62 = vmul.f32 %v107_v21, %v590_v50  ;;  %v111_v63 = vmul.f32 %v110_v22, %v592_v51  ;;  %v115_v0 = vmul.f32 %v114_v23, %v582_v44  ;;  %v123_v1 = vmul.f32 %v122_v25, %v584_v45  ;;  %s684_s23 = sld [smem:[#allocation2 + $0x1e]]  ;;  %s686_s24 = sld [smem:[#allocation2 + $0x28]] }
  0x39   :  { %v63_v2 = vadd.f32 %v62_v59, %v59_v58  ;;  %v87_v3 = vadd.f32 %v86_v61, %v83_v60  ;;  %v127_v4 = vmul.f32 %v126_v28, %v580_v43  ;;  %v133_v5 = vmul.f32 %v132_v29, %v590_v50  ;;  %s691_s25 = sld [smem:[#allocation2 + $0x32]]  ;;  %s696_s26 = sld [smem:[#allocation2 + $0x3c]] }
  0x3a   :  { %v112_v6 = vadd.f32 %v111_v63, %v108_v62  ;;  %v136_v7 = vmul.f32 %v135_v30, %v592_v51  ;;  %v140_v8 = vmul.f32 %v139_v31, %v582_v44  ;;  %v148_v9 = vmul.f32 %v147_v33, %v584_v45  ;;  %s701_s27 = sld [smem:[#allocation2 + $0xb]]  ;;  %s703_s28 = sld [smem:[#allocation2 + $0x15]] }
  0x3b   :  { %v67_v10 = vadd.f32 %v66_v52, %v63_v2  ;;  %v91_v11 = vadd.f32 %v90_v55, %v87_v3  ;;  %v152_v12 = vmul.f32 %v151_v37, %v580_v43  ;;  %v158_v13 = vmul.f32 %v157_v38, %v590_v50  ;;  %s708_s0 = sld [smem:[#allocation2 + $0x1f]]  ;;  %s712_s29 = sld [smem:[#allocation2 + $0x29]] }
  0x3c   :  { %v116_v14 = vadd.f32 %v115_v0, %v112_v6  ;;  %v137_v15 = vadd.f32 %v136_v7, %v133_v5  ;;  %v161_v16 = vmul.f32 %v160_v39, %v592_v51  ;;  %v165_v17 = vmul.f32 %v164_v40, %v582_v44 }
  0x3d   :  { %v71_v18 = vadd.f32 %v70_v46, %v67_v10  ;;  %v95_v19 = vadd.f32 %v94_v47, %v91_v11  ;;  %v169_v20 = vmul.f32 %v168_v41, %v573_v36  ;;  %v172_v21 = vstv %s596_s30  ;;  %s714_s30 = sld [smem:[#allocation2 + $0x33]] }
  0x3e   :  { %v120_v22 = vadd.f32 %v119_v48, %v116_v14  ;;  %v141_v23 = vadd.f32 %v140_v8, %v137_v15  ;;  %v162_v24 = vadd.f32 %v161_v16, %v158_v13  ;;  %v173_v25 = vmul.f32 %v172_v21, %v584_v45 }
  0x3f   :  { %v75_v26 = vadd.f32 %v74_v53, %v71_v18  ;;  %v99_v27 = vadd.f32 %v98_v56, %v95_v19  ;;  %v176_v28 = vstv %s606_s3  ;;  %v182_v29 = vstv %s608_s4  ;;  %s722_s3 = sld [smem:[#allocation2 + $0x3d]]  ;;  %s452_s4 = smov [#allocation7]  }
  0x40   :  { %v124_v30 = vadd.f32 %v123_v1, %v120_v22  ;;  %v145_v31 = vadd.f32 %v144_v49, %v141_v23  ;;  %v166_v32 = vadd.f32 %v165_v17, %v162_v24  ;;  %v177_v33 = vmul.f32 %v176_v28, %v580_v43 }
  0x41   :  { %v79_v34 = vadd.f32 %v78_v54, %v75_v26  ;;  %v103_v35 = vadd.f32 %v102_v57, %v99_v27  ;;  %v183_v37 = vmul.f32 %v182_v29, %v590_v50  ;;  %v185_v38 = vstv %s616_s5  ;;  %s311_s5 = sshll.u32 %s452_s4, 4  ;;  %s312_s5 = int_to_ptr.vmem [resolvable:$true] %s311_s5 }
  0x42   :  { %v128_v39 = vadd.f32 %v127_v4, %v124_v30  ;;  %v149_v40 = vadd.f32 %v148_v9, %v145_v31  ;;  %v170_v41 = vadd.f32 %v169_v20, %v166_v32  ;;  %v186_v42 = vmul.f32 %v185_v38, %v592_v51  ;;  %p427_p12 = scmp.lt.s32.totalorder %s312_s5, %s312_s5 }
  0x43   :  { %80 = vst [vmem:[#allocation7] sm:$0xff] %v79_v34  ;;  %105 = vst [vmem:[#allocation7 + $0x8] sm:$0xff] %v103_v35  ;;  %v189_v46 = vstv %s621_s6  ;;  %v193_v47 = vstv %s625_s7  ;;  %v197_v48 = vstv %s627_s8  ;;  %v201_v57 = vstv %s633_s9  ;;  %s422_s6 = scalar_lea.vmem %s312_s5, 1280 }
  0x44   :  { %130 = vst [vmem:[#allocation7 + $0x10] sm:$0xff] %v128_v39  ;;  %v153_v49 = vadd.f32 %v152_v12, %v149_v40  ;;  %v174_v52 = vadd.f32 %v173_v25, %v170_v41  ;;  %v187_v53 = vadd.f32 %v186_v42, %v183_v37  ;;  %v190_v54 = vmul.f32 %v189_v46, %v582_v44  ;;  %p423_p11 = scmp.ne.s32.totalorder %s312_s5, %s422_s6  ;;  %p428_p13 = scmp.lt.s32.totalorder %s422_s6, %s422_s6 }
  0x45   :  { %v194_v55 = vmul.f32 %v193_v47, %v573_v36  ;;  %v198_v56 = vmul.f32 %v197_v48, %v584_v45  ;;  %v207_v58 = vstv %s635_s1  ;;  %v210_v62 = vstv %s638_s10 }
  0x46   :  { %155 = vst [vmem:[#allocation7 + $0x18] sm:$0xff] %v153_v49  ;;  %v178_v59 = vadd.f32 %v177_v33, %v174_v52  ;;  %v191_v60 = vadd.f32 %v190_v54, %v187_v53  ;;  %v208_v61 = vmul.f32 %v207_v58, %v590_v50  ;;  %v211_v63 = vmul.f32 %v210_v62, %v592_v51  ;;  %p429_p0 = por %p428_p13, %p427_p12 }
  0x47   :  { %v214_v0 = vstv %s640_s11  ;;  %v218_v1 = vstv %s644_s12  ;;  %v222_v2 = vstv %s646_s13  ;;  %v202_v4 = vmul.f32 %v201_v57, %v580_v43 }
  0x48   :  { %180 = vst [vmem:[#allocation7 + $0x20] sm:$0xff] %v178_v59  ;;  %v195_v3 = vadd.f32 %v194_v55, %v191_v60  ;;  %v215_v5 = vmul.f32 %v214_v0, %v582_v44  ;;  %v219_v6 = vmul.f32 %v218_v1, %v573_v36  ;;  %v212_v7 = vadd.f32 %v211_v63, %v208_v61  ;;  %p430_p1 = pnand %p429_p0, %p423_p11 }
  0x49   :  { %v223_v8 = vmul.f32 %v222_v2, %v584_v45  ;;  %v232_v9 = vstv %s651_s14  ;;  %v235_v10 = vstv %s653_s15  ;;  %v226_v12 = vstv %s656_s16 }
  0x4a   :  { %v199_v11 = vadd.f32 %v198_v56, %v195_v3  ;;  %v233_v13 = vmul.f32 %v232_v9, %v590_v50  ;;  %v236_v14 = vmul.f32 %v235_v10, %v592_v51  ;;  %v216_v15 = vadd.f32 %v215_v5, %v212_v7 }
  0x4b   :  { %v239_v16 = vstv %s658_s17  ;;  %v243_v17 = vstv %s663_s18  ;;  %v247_v18 = vstv %s665_s19  ;;  %v227_v24 = vmul.f32 %v226_v12, %v580_v43 }
  0x4c   :  { %v203_v19 = vadd.f32 %v202_v4, %v199_v11  ;;  %v237_v20 = vadd.f32 %v236_v14, %v233_v13  ;;  %v240_v21 = vmul.f32 %v239_v16, %v582_v44  ;;  %v244_v22 = vmul.f32 %v243_v17, %v573_v36 }
  0x4d   :  { %v220_v23 = vadd.f32 %v219_v6, %v216_v15  ;;  %v251_v25 = vstv %s672_s20  ;;  %v257_v26 = vstv %s674_s21  ;;  %v248_v28 = vmul.f32 %v247_v18, %v584_v45 }
  0x4e   :  { %205 = vst [vmem:[#allocation7 + $0x28] sm:$0xff] %v203_v19  ;;  %v241_v27 = vadd.f32 %v240_v21, %v237_v20  ;;  %v258_v29 = vmul.f32 %v257_v26, %v590_v50  ;;  %v260_v30 = vstv %s678_s22  ;;  %v264_v33 = vstv %s684_s23 }
  0x4f   :  { %v224_v31 = vadd.f32 %v223_v8, %v220_v23  ;;  %v261_v32 = vmul.f32 %v260_v30, %v592_v51  ;;  %v268_v34 = vstv %s686_s24  ;;  %v252_v37 = vmul.f32 %v251_v25, %v580_v43 }
  0x50   :  { %v245_v35 = vadd.f32 %v244_v22, %v241_v27  ;;  %v265_v38 = vmul.f32 %v264_v33, %v582_v44  ;;  %v272_v39 = vstv %s691_s25  ;;  %v269_v42 = vmul.f32 %v268_v34, %v573_v36 }
  0x51   :  { %v228_v40 = vadd.f32 %v227_v24, %v224_v31  ;;  %v262_v41 = vadd.f32 %v261_v32, %v258_v29  ;;  %v273_v46 = vmul.f32 %v272_v39, %v584_v45  ;;  %v276_v48 = vstv %s696_s26 }
  0x52   :  { %v249_v47 = vadd.f32 %v248_v28, %v245_v35  ;;  %v282_v49 = vstv %s701_s27  ;;  %v285_v52 = vstv %s703_s28  ;;  %v289_v56 = vstv %s708_s0 }
  0x53   :  { %230 = vst [vmem:[#allocation7 + $0x30] sm:$0xff] %v228_v40  ;;  %v266_v53 = vadd.f32 %v265_v38, %v262_v41  ;;  %v283_v54 = vmul.f32 %v282_v49, %v590_v50  ;;  %v286_v55 = vmul.f32 %v285_v52, %v592_v51  ;;  %v290_v58 = vmul.f32 %v289_v56, %v582_v44 }
  0x54   :  { %v253_v57 = vadd.f32 %v252_v37, %v249_v47  ;;  %v293_v59 = vstv %s712_s29  ;;  %v297_v60 = vstv %s714_s30  ;;  %v277_v62 = vmul.f32 %v276_v48, %v580_v43 }
  0x55   :  { %v270_v61 = vadd.f32 %v269_v42, %v266_v53  ;;  %v287_v63 = vadd.f32 %v286_v55, %v283_v54  ;;  %v294_v0 = vmul.f32 %v293_v59, %v573_v36  ;;  %v301_v1 = vstv %s722_s3 }
  0x56   :  { %255 = vst [vmem:[#allocation7 + $0x38] sm:$0xff] %v253_v57  ;;  %v298_v50 = vmul.f32 %v297_v60, %v584_v45  ;;  %v302_v5 = vmul.f32 %v301_v1, %v580_v43 }
  0x57   :  { %v274_v2 = vadd.f32 %v273_v46, %v270_v61  ;;  %v291_v3 = vadd.f32 %v290_v58, %v287_v63 }
  0x59   :  { %v278_v4 = vadd.f32 %v277_v62, %v274_v2  ;;  %v295_v51 = vadd.f32 %v294_v0, %v291_v3 }
  0x5b   :  { %280 = vst [vmem:[#allocation7 + $0x40] sm:$0xff] %v278_v4  ;;  %v299_v44 = vadd.f32 %v298_v50, %v295_v51 }
  0x5d   :  { %v303_v6 = vadd.f32 %v302_v5, %v299_v44 }
  0x5f   :  { %305 = vst [vmem:[#allocation7 + $0x48] sm:$0xff] %v303_v6 }
  0x60   :  { %433 = shalt.err (!%p430_p1)
}
  0x61   :  { %s434_s9 = scalar_lea.hbm %s760_s2, 1280 }
  0x62   :  { %p435_p2 = scmp.ne.s32.totalorder %s760_s2, %s434_s9  ;;  %p438_p3 = scmp.lt.u32.totalorder %s434_s9, %s760_s2 }
  0x64   :  { %p440_p4 = pnand %p438_p3, %p435_p2 }
  0x66   :  { %443 = shalt.err (!%p440_p4)
}
  0x67   :  { %s453_s13 = smov 128   ;;  %s454_s14 = smov 8  }
  0x68   :  { %317 = dma.vmem_to_hbm [thread:$0]  %s312_s5, 1280, %s760_s2, [#allocation4], %s453_s13, %s453_s13, %s454_s14  }
  0x69   :  { %448 = dma.done.wait [#allocation4], 1280  }
  0x6a   :  { %449 = vsyncadd [#allocation4], 4294966016 }
  0x6b   :  { %321 = vsyncpa [#allocation3], 1 }
  0x6c   :  { %322 = vsyncpa [#allocation4], 1 }
  0x6d   :  { %323 = vsyncpa [#allocation5], 1 }

</bundles_post_ra>
